<compile_context>
chip_gen: v6e
topology: v6e:2x2x1
jax: 0.10.0
libtpu: 0.0.40
codegen_flags: <defaults>
</compile_context>

<pallas_src>
import jax
import jax.numpy as jnp
from jax.experimental import pallas as pl
from jax.experimental.pallas import tpu as pltpu


def decoder_kernel(emb_ref, h_ref, enc_ref,
                   wak_ref, wae_ref, ba_ref, v_ref,
                   wih0_ref, whh0_ref, bih0_ref, bhh0_ref,
                   wih1_ref, whh1_ref, bih1_ref, bhh1_ref,
                   wout_ref, bout_ref,
                   logp_ref, hnew_ref):
    f32 = jnp.float32
    T, B, H = enc_ref.shape

    emb = emb_ref[...]                  # [B, E]
    h0 = h_ref[0]                       # [B, H]  (GRU layer 0 hidden)
    h1 = h_ref[1]                       # [B, H]  (GRU layer 1 hidden)
    enc = enc_ref[...]                  # [T, B, H]

    # ---------------- Attention (Bahdanau-style, as in HRED.Attention) -------
    # key = last_hidden.sum(axis=0)   (n_layer == 2)
    key = h0 + h1                                                        # [B, H]
    key_proj = (jnp.dot(key, wak_ref[...], preferred_element_type=f32)
                + ba_ref[...])                                           # [B, H]

    # Single batched contraction over all T encoder steps (no per-t loop).
    wae_b = jnp.broadcast_to(wae_ref[...], (T, H, H))                    # [T, H, H]
    enc_proj = jnp.einsum('tbh,thk->tbk', enc, wae_b,
                          preferred_element_type=f32)                    # [T, B, H]
    energy = jnp.tanh(enc_proj + key_proj[None, :, :])                   # [T, B, H]
    scores = jnp.sum(energy * v_ref[...], axis=-1, keepdims=True)        # [T, B, 1]

    # softmax over time (axis 0), numerically stable.
    m = jnp.max(scores, axis=0, keepdims=True)                           # [1, B, 1]
    ex = jnp.exp(scores - m)                                             # [T, B, 1]
    attn = ex / jnp.sum(ex, axis=0, keepdims=True)                       # [T, B, 1]

    # context[b, :] = sum_t attn[t, b] * enc[t, b, :]   (one broadcast + reduce)
    context = jnp.sum(attn * enc, axis=0)                                # [B, H]

    # ---------------- 2-layer GRU, single timestep ----------------------------
    def gru_cell(gi, gh, h_prev):
        r = jax.nn.sigmoid(gi[:, :H] + gh[:, :H])
        z = jax.nn.sigmoid(gi[:, H:2 * H] + gh[:, H:2 * H])
        n = jnp.tanh(gi[:, 2 * H:] + r * gh[:, 2 * H:])
        return (1.0 - z) * n + z * h_prev

    # layer 0: fused input matmul on concat([embedded, context], -1)
    x0 = jnp.concatenate([emb, context], axis=1)                         # [B, E+H]
    gi0 = jnp.dot(x0, wih0_ref[...], preferred_element_type=f32) + bih0_ref[...]
    gh0 = jnp.dot(h0, whh0_ref[...], preferred_element_type=f32) + bhh0_ref[...]
    h0_new = gru_cell(gi0, gh0, h0)

    gi1 = jnp.dot(h0_new, wih1_ref[...], preferred_element_type=f32) + bih1_ref[...]
    gh1 = jnp.dot(h1, whh1_ref[...], preferred_element_type=f32) + bhh1_ref[...]
    h1_new = gru_cell(gi1, gh1, h1)

    # ---------------- output Linear + log_softmax ------------------------------
    logits = jnp.dot(h1_new, wout_ref[...], preferred_element_type=f32) + bout_ref[...]
    mx = jnp.max(logits, axis=1, keepdims=True)
    sh = logits - mx
    lse = jnp.log(jnp.sum(jnp.exp(sh), axis=1, keepdims=True))
    logp_ref[...] = sh - lse

    hnew_ref[0] = h0_new
    hnew_ref[1] = h1_new


def decoder_forward(params, inpt, last_hidden, encoder_outputs):
    """inpt: [B] int32 token ids; last_hidden: [2,B,H]; encoder_outputs: [T,B,H]."""
    emb = jnp.take(params['embed'], inpt, axis=0)          # glue: embedding gather
    T, B, H = encoder_outputs.shape
    L = last_hidden.shape[0]
    V = params['w_out'].shape[0]

    wa = params['w_attn']
    # Pre-split / pre-transpose all weights on the XLA side (no in-kernel .T / slices).
    args = (emb, last_hidden, encoder_outputs,
            wa[:, :H].T,                       # key half      [H, H]
            wa[:, H:].T,                       # encoder half  [H, H]
            params['b_attn'][None, :],         # [1, H]
            params['v'][None, None, :],        # [1, 1, H]
            params['w_ih0'].T, params['w_hh0'].T,
            params['b_ih0'][None, :], params['b_hh0'][None, :],
            params['w_ih1'].T, params['w_hh1'].T,
            params['b_ih1'][None, :], params['b_hh1'][None, :],
            params['w_out'].T,                 # [H, V]
            params['b_out'][None, :])          # [1, V]

    vmem = pl.BlockSpec(memory_space=pltpu.MemorySpace.VMEM)
    logp, hnew = pl.pallas_call(
        decoder_kernel,
        out_shape=(jax.ShapeDtypeStruct((B, V), jnp.float32),
                   jax.ShapeDtypeStruct((L, B, H), jnp.float32)),
        in_specs=[vmem] * len(args),
        out_specs=(vmem, vmem),
        # Update the hidden state in place (last_hidden -> new hidden output).
        input_output_aliases={1: 1},
    )(*args)
    return logp, hnew


def decoder_reference(params, inpt, last_hidden, encoder_outputs):
    """Pure-JAX reference mirroring the PyTorch forward (eval mode)."""
    H = last_hidden.shape[-1]
    emb = params['embed'][inpt]                                   # [B, E]
    key = last_hidden.sum(axis=0)                                 # [B, H]
    wa, ba, v = params['w_attn'], params['b_attn'], params['v']
    T, B, _ = encoder_outputs.shape
    h_rep = jnp.broadcast_to(key[None], (T, B, H))
    cat = jnp.concatenate([h_rep, encoder_outputs], axis=-1)      # [T, B, 2H]
    energy = jnp.tanh(cat @ wa.T + ba)                            # [T, B, H]
    scores = jnp.einsum('tbh,h->bt', energy, v)                   # [B, T]
    attn = jax.nn.softmax(scores, axis=1)
    context = jnp.einsum('bt,tbh->bh', attn, encoder_outputs)     # [B, H]
    x0 = jnp.concatenate([emb, context], axis=1)

    def cell(x, h, wih, whh, bih, bhh):
        gi = x @ wih.T + bih
        gh = h @ whh.T + bhh
        r = jax.nn.sigmoid(gi[:, :H] + gh[:, :H])
        z = jax.nn.sigmoid(gi[:, H:2 * H] + gh[:, H:2 * H])
        n = jnp.tanh(gi[:, 2 * H:] + r * gh[:, 2 * H:])
        return (1.0 - z) * n + z * h

    h0n = cell(x0, last_hidden[0], params['w_ih0'], params['w_hh0'],
               params['b_ih0'], params['b_hh0'])
    h1n = cell(h0n, last_hidden[1], params['w_ih1'], params['w_hh1'],
               params['b_ih1'], params['b_hh1'])
    logits = h1n @ params['w_out'].T + params['b_out']
    return jax.nn.log_softmax(logits, axis=1), jnp.stack([h0n, h1n], axis=0)


if __name__ == "__main__":
    # B=8 fills the sublane axis; V=128 gives a lane-dense output store.
    V, E, H, T, B, L = 128, 32, 32, 8, 8, 2

    root = jax.random.PRNGKey(0)
    ks = jax.random.split(root, 16)

    def xavier(k, shape):
        fan_out, fan_in = shape
        std = (2.0 / (fan_in + fan_out)) ** 0.5
        return std * jax.random.normal(k, shape, dtype=jnp.float32)

    params = {
        'embed':  jax.random.normal(ks[0], (V, E), jnp.float32),
        'w_attn': xavier(ks[1], (H, 2 * H)),
        'b_attn': jnp.zeros((H,), jnp.float32),
        'v':      jax.random.uniform(ks[2], (H,), jnp.float32, -1.0, 1.0) / (H ** 0.5),
        'w_ih0':  xavier(ks[3], (3 * H, E + H)),
        'w_hh0':  xavier(ks[4], (3 * H, H)),
        'b_ih0':  jnp.zeros((3 * H,), jnp.float32),
        'b_hh0':  jnp.zeros((3 * H,), jnp.float32),
        'w_ih1':  xavier(ks[5], (3 * H, H)),
        'w_hh1':  xavier(ks[6], (3 * H, H)),
        'b_ih1':  jnp.zeros((3 * H,), jnp.float32),
        'b_hh1':  jnp.zeros((3 * H,), jnp.float32),
        'w_out':  xavier(ks[7], (V, H)),
        'b_out':  jnp.zeros((V,), jnp.float32),
    }

    inpt = jax.random.randint(ks[8], (B,), 0, V)                         # [B]
    last_hidden = jax.random.normal(ks[9], (L, B, H), jnp.float32)       # [2, B, H]
    encoder_outputs = jax.random.normal(ks[10], (T, B, H), jnp.float32)  # [T, B, H]

    # Reference first (kernel aliases the hidden-state buffer).
    ref_logp, ref_hidden = decoder_reference(params, inpt, last_hidden, encoder_outputs)

    logp, hidden = decoder_forward(params, inpt, last_hidden, encoder_outputs)
    jax.block_until_ready((logp, hidden))

    assert logp.shape == (B, V) and hidden.shape == (L, B, H)
    assert bool(jnp.all(jnp.isfinite(logp))) and bool(jnp.all(jnp.isfinite(hidden)))
    assert bool(jnp.allclose(logp, ref_logp, atol=5e-2, rtol=5e-2))
    assert bool(jnp.allclose(hidden, ref_hidden, atol=5e-2, rtol=5e-2))
    print("KERNEL_OK")
</pallas_src>

<mosaic_0001>
module attributes {stable_mosaic.version = 11 : i64} {
  func.func @decoder_kernel(%arg0: memref<8x32xf32, #tpu.memory_space<vmem>>, %arg1: memref<2x8x32xf32, #tpu.memory_space<vmem>>, %arg2: memref<8x8x32xf32, #tpu.memory_space<vmem>>, %arg3: memref<32x32xf32, #tpu.memory_space<vmem>>, %arg4: memref<32x32xf32, #tpu.memory_space<vmem>>, %arg5: memref<1x32xf32, #tpu.memory_space<vmem>>, %arg6: memref<1x1x32xf32, #tpu.memory_space<vmem>>, %arg7: memref<64x96xf32, #tpu.memory_space<vmem>>, %arg8: memref<32x96xf32, #tpu.memory_space<vmem>>, %arg9: memref<1x96xf32, #tpu.memory_space<vmem>>, %arg10: memref<1x96xf32, #tpu.memory_space<vmem>>, %arg11: memref<32x96xf32, #tpu.memory_space<vmem>>, %arg12: memref<32x96xf32, #tpu.memory_space<vmem>>, %arg13: memref<1x96xf32, #tpu.memory_space<vmem>>, %arg14: memref<1x96xf32, #tpu.memory_space<vmem>>, %arg15: memref<32x128xf32, #tpu.memory_space<vmem>>, %arg16: memref<1x128xf32, #tpu.memory_space<vmem>>, %arg17: memref<8x128xf32, #tpu.memory_space<vmem>>, %arg18: memref<2x8x32xf32, #tpu.memory_space<vmem>>) attributes {dimension_semantics = [], scalar_prefetch = 0 : i64, scratch_operands = 0 : i64, tpu.core_type = #tpu.core_type<tc>} {
    %c0 = arith.constant 0 : index
    %c0_0 = arith.constant 0 : index
    %0 = vector.load %arg0[%c0, %c0_0] : memref<8x32xf32, #tpu.memory_space<vmem>>, vector<8x32xf32>
    %c0_1 = arith.constant 0 : index
    %c0_2 = arith.constant 0 : index
    %c0_3 = arith.constant 0 : index
    %1 = vector.load %arg1[%c0_1, %c0_2, %c0_3] : memref<2x8x32xf32, #tpu.memory_space<vmem>>, vector<1x8x32xf32>
    %2 = vector.shape_cast %1 : vector<1x8x32xf32> to vector<8x32xf32>
    %c1 = arith.constant 1 : index
    %c0_4 = arith.constant 0 : index
    %c0_5 = arith.constant 0 : index
    %3 = vector.load %arg1[%c1, %c0_4, %c0_5] : memref<2x8x32xf32, #tpu.memory_space<vmem>>, vector<1x8x32xf32>
    %4 = vector.shape_cast %3 : vector<1x8x32xf32> to vector<8x32xf32>
    %c0_6 = arith.constant 0 : index
    %c0_7 = arith.constant 0 : index
    %c0_8 = arith.constant 0 : index
    %5 = vector.load %arg2[%c0_6, %c0_7, %c0_8] : memref<8x8x32xf32, #tpu.memory_space<vmem>>, vector<8x8x32xf32>
    %6 = arith.addf %2, %4 : vector<8x32xf32>
    %c0_9 = arith.constant 0 : index
    %c0_10 = arith.constant 0 : index
    %7 = vector.load %arg3[%c0_9, %c0_10] : memref<32x32xf32, #tpu.memory_space<vmem>>, vector<32x32xf32>
    %cst = arith.constant dense<0.000000e+00> : vector<8x32xf32>
    %8 = tpu.matmul %6, %7, %cst {dimension_numbers = #tpu.dot_dimension_numbers<[1], [0], [0], [1], [0, 0, 1, 1], [], []>} : vector<8x32xf32>, vector<32x32xf32>, vector<8x32xf32> -> vector<8x32xf32>
    %c0_11 = arith.constant 0 : index
    %c0_12 = arith.constant 0 : index
    %9 = vector.load %arg5[%c0_11, %c0_12] : memref<1x32xf32, #tpu.memory_space<vmem>>, vector<1x32xf32>
    %10 = vector.broadcast %9 : vector<1x32xf32> to vector<8x32xf32>
    %11 = arith.addf %8, %10 : vector<8x32xf32>
    %c0_13 = arith.constant 0 : index
    %c0_14 = arith.constant 0 : index
    %12 = vector.load %arg4[%c0_13, %c0_14] : memref<32x32xf32, #tpu.memory_space<vmem>>, vector<32x32xf32>
    %13 = vector.shape_cast %12 : vector<32x32xf32> to vector<1x32x32xf32>
    %14 = vector.broadcast %13 : vector<1x32x32xf32> to vector<8x32x32xf32>
    "tpu.trace_start"() <{level = 10 : i32, message = "tbh,thk->tbk"}> : () -> ()
    %cst_15 = arith.constant dense<0.000000e+00> : vector<8x8x32xf32>
    %15 = tpu.matmul %5, %14, %cst_15 {dimension_numbers = #tpu.dot_dimension_numbers<[2], [1], [1], [2], [0, 0, 0, 1, 1, 2], [0], [0]>} : vector<8x8x32xf32>, vector<8x32x32xf32>, vector<8x8x32xf32> -> vector<8x8x32xf32>
    "tpu.trace_stop"() : () -> ()
    %16 = vector.shape_cast %11 : vector<8x32xf32> to vector<1x8x32xf32>
    %17 = vector.broadcast %16 : vector<1x8x32xf32> to vector<8x8x32xf32>
    %18 = arith.addf %15, %17 : vector<8x8x32xf32>
    %19 = math.tanh %18 : vector<8x8x32xf32>
    %c0_16 = arith.constant 0 : index
    %c0_17 = arith.constant 0 : index
    %c0_18 = arith.constant 0 : index
    %20 = vector.load %arg6[%c0_16, %c0_17, %c0_18] : memref<1x1x32xf32, #tpu.memory_space<vmem>>, vector<1x1x32xf32>
    %21 = vector.broadcast %20 : vector<1x1x32xf32> to vector<8x8x32xf32>
    %22 = arith.mulf %19, %21 : vector<8x8x32xf32>
    %cst_19 = arith.constant dense<0.000000e+00> : vector<8x8xf32>
    %23 = vector.multi_reduction <add>, %22, %cst_19 [2] : vector<8x8x32xf32> to vector<8x8xf32>
    %24 = vector.shape_cast %23 : vector<8x8xf32> to vector<8x8x1xf32>
    %cst_20 = arith.constant dense<0xFF800000> : vector<8x1xf32>
    %25 = vector.multi_reduction <maximumf>, %24, %cst_20 [0] : vector<8x8x1xf32> to vector<8x1xf32>
    %26 = vector.shape_cast %25 : vector<8x1xf32> to vector<1x8x1xf32>
    %27 = vector.broadcast %26 : vector<1x8x1xf32> to vector<8x8x1xf32>
    %28 = arith.subf %24, %27 : vector<8x8x1xf32>
    %29 = math.exp %28 : vector<8x8x1xf32>
    %cst_21 = arith.constant dense<0.000000e+00> : vector<8x1xf32>
    %30 = vector.multi_reduction <add>, %29, %cst_21 [0] : vector<8x8x1xf32> to vector<8x1xf32>
    %31 = vector.shape_cast %30 : vector<8x1xf32> to vector<1x8x1xf32>
    %32 = vector.broadcast %31 : vector<1x8x1xf32> to vector<8x8x1xf32>
    %33 = arith.divf %29, %32 : vector<8x8x1xf32>
    %34 = vector.broadcast %33 : vector<8x8x1xf32> to vector<8x8x32xf32>
    %35 = arith.mulf %34, %5 : vector<8x8x32xf32>
    %cst_22 = arith.constant dense<0.000000e+00> : vector<8x32xf32>
    %36 = vector.multi_reduction <add>, %35, %cst_22 [0] : vector<8x8x32xf32> to vector<8x32xf32>
    %37 = tpu.concatenate %0, %36 in 1 : vector<8x32xf32>, vector<8x32xf32> -> vector<8x64xf32>
    %c0_23 = arith.constant 0 : index
    %c0_24 = arith.constant 0 : index
    %38 = vector.load %arg7[%c0_23, %c0_24] : memref<64x96xf32, #tpu.memory_space<vmem>>, vector<64x96xf32>
    %cst_25 = arith.constant dense<0.000000e+00> : vector<8x96xf32>
    %39 = tpu.matmul %37, %38, %cst_25 {dimension_numbers = #tpu.dot_dimension_numbers<[1], [0], [0], [1], [0, 0, 1, 1], [], []>} : vector<8x64xf32>, vector<64x96xf32>, vector<8x96xf32> -> vector<8x96xf32>
    %c0_26 = arith.constant 0 : index
    %c0_27 = arith.constant 0 : index
    %40 = vector.load %arg9[%c0_26, %c0_27] : memref<1x96xf32, #tpu.memory_space<vmem>>, vector<1x96xf32>
    %41 = vector.broadcast %40 : vector<1x96xf32> to vector<8x96xf32>
    %42 = arith.addf %39, %41 : vector<8x96xf32>
    %c0_28 = arith.constant 0 : index
    %c0_29 = arith.constant 0 : index
    %43 = vector.load %arg8[%c0_28, %c0_29] : memref<32x96xf32, #tpu.memory_space<vmem>>, vector<32x96xf32>
    %cst_30 = arith.constant dense<0.000000e+00> : vector<8x96xf32>
    %44 = tpu.matmul %2, %43, %cst_30 {dimension_numbers = #tpu.dot_dimension_numbers<[1], [0], [0], [1], [0, 0, 1, 1], [], []>} : vector<8x32xf32>, vector<32x96xf32>, vector<8x96xf32> -> vector<8x96xf32>
    %c0_31 = arith.constant 0 : index
    %c0_32 = arith.constant 0 : index
    %45 = vector.load %arg10[%c0_31, %c0_32] : memref<1x96xf32, #tpu.memory_space<vmem>>, vector<1x96xf32>
    %46 = vector.broadcast %45 : vector<1x96xf32> to vector<8x96xf32>
    %47 = arith.addf %44, %46 : vector<8x96xf32>
    %48 = vector.extract_strided_slice %42 {offsets = [0, 0], sizes = [8, 32], strides = [1, 1]} : vector<8x96xf32> to vector<8x32xf32>
    %49 = vector.extract_strided_slice %47 {offsets = [0, 0], sizes = [8, 32], strides = [1, 1]} : vector<8x96xf32> to vector<8x32xf32>
    %50 = arith.addf %48, %49 : vector<8x32xf32>
    %51 = arith.negf %50 : vector<8x32xf32>
    %52 = math.exp %51 : vector<8x32xf32>
    %cst_33 = arith.constant 1.000000e+00 : f32
    %53 = vector.broadcast %cst_33 : f32 to vector<8x32xf32>
    %54 = arith.addf %53, %52 : vector<8x32xf32>
    %55 = arith.divf %53, %54 : vector<8x32xf32>
    %56 = vector.extract_strided_slice %42 {offsets = [0, 32], sizes = [8, 32], strides = [1, 1]} : vector<8x96xf32> to vector<8x32xf32>
    %57 = vector.extract_strided_slice %47 {offsets = [0, 32], sizes = [8, 32], strides = [1, 1]} : vector<8x96xf32> to vector<8x32xf32>
    %58 = arith.addf %56, %57 : vector<8x32xf32>
    %59 = arith.negf %58 : vector<8x32xf32>
    %60 = math.exp %59 : vector<8x32xf32>
    %cst_34 = arith.constant 1.000000e+00 : f32
    %61 = vector.broadcast %cst_34 : f32 to vector<8x32xf32>
    %62 = arith.addf %61, %60 : vector<8x32xf32>
    %63 = arith.divf %61, %62 : vector<8x32xf32>
    %64 = vector.extract_strided_slice %42 {offsets = [0, 64], sizes = [8, 32], strides = [1, 1]} : vector<8x96xf32> to vector<8x32xf32>
    %65 = vector.extract_strided_slice %47 {offsets = [0, 64], sizes = [8, 32], strides = [1, 1]} : vector<8x96xf32> to vector<8x32xf32>
    %66 = arith.mulf %55, %65 : vector<8x32xf32>
    %67 = arith.addf %64, %66 : vector<8x32xf32>
    %68 = math.tanh %67 : vector<8x32xf32>
    %cst_35 = arith.constant 1.000000e+00 : f32
    %69 = vector.broadcast %cst_35 : f32 to vector<8x32xf32>
    %70 = arith.subf %69, %63 : vector<8x32xf32>
    %71 = arith.mulf %70, %68 : vector<8x32xf32>
    %72 = arith.mulf %63, %2 : vector<8x32xf32>
    %73 = arith.addf %71, %72 : vector<8x32xf32>
    %c0_36 = arith.constant 0 : index
    %c0_37 = arith.constant 0 : index
    %74 = vector.load %arg11[%c0_36, %c0_37] : memref<32x96xf32, #tpu.memory_space<vmem>>, vector<32x96xf32>
    %cst_38 = arith.constant dense<0.000000e+00> : vector<8x96xf32>
    %75 = tpu.matmul %73, %74, %cst_38 {dimension_numbers = #tpu.dot_dimension_numbers<[1], [0], [0], [1], [0, 0, 1, 1], [], []>} : vector<8x32xf32>, vector<32x96xf32>, vector<8x96xf32> -> vector<8x96xf32>
    %c0_39 = arith.constant 0 : index
    %c0_40 = arith.constant 0 : index
    %76 = vector.load %arg13[%c0_39, %c0_40] : memref<1x96xf32, #tpu.memory_space<vmem>>, vector<1x96xf32>
    %77 = vector.broadcast %76 : vector<1x96xf32> to vector<8x96xf32>
    %78 = arith.addf %75, %77 : vector<8x96xf32>
    %c0_41 = arith.constant 0 : index
    %c0_42 = arith.constant 0 : index
    %79 = vector.load %arg12[%c0_41, %c0_42] : memref<32x96xf32, #tpu.memory_space<vmem>>, vector<32x96xf32>
    %cst_43 = arith.constant dense<0.000000e+00> : vector<8x96xf32>
    %80 = tpu.matmul %4, %79, %cst_43 {dimension_numbers = #tpu.dot_dimension_numbers<[1], [0], [0], [1], [0, 0, 1, 1], [], []>} : vector<8x32xf32>, vector<32x96xf32>, vector<8x96xf32> -> vector<8x96xf32>
    %c0_44 = arith.constant 0 : index
    %c0_45 = arith.constant 0 : index
    %81 = vector.load %arg14[%c0_44, %c0_45] : memref<1x96xf32, #tpu.memory_space<vmem>>, vector<1x96xf32>
    %82 = vector.broadcast %81 : vector<1x96xf32> to vector<8x96xf32>
    %83 = arith.addf %80, %82 : vector<8x96xf32>
    %84 = vector.extract_strided_slice %78 {offsets = [0, 0], sizes = [8, 32], strides = [1, 1]} : vector<8x96xf32> to vector<8x32xf32>
    %85 = vector.extract_strided_slice %83 {offsets = [0, 0], sizes = [8, 32], strides = [1, 1]} : vector<8x96xf32> to vector<8x32xf32>
    %86 = arith.addf %84, %85 : vector<8x32xf32>
    %87 = arith.negf %86 : vector<8x32xf32>
    %88 = math.exp %87 : vector<8x32xf32>
    %cst_46 = arith.constant 1.000000e+00 : f32
    %89 = vector.broadcast %cst_46 : f32 to vector<8x32xf32>
    %90 = arith.addf %89, %88 : vector<8x32xf32>
    %91 = arith.divf %89, %90 : vector<8x32xf32>
    %92 = vector.extract_strided_slice %78 {offsets = [0, 32], sizes = [8, 32], strides = [1, 1]} : vector<8x96xf32> to vector<8x32xf32>
    %93 = vector.extract_strided_slice %83 {offsets = [0, 32], sizes = [8, 32], strides = [1, 1]} : vector<8x96xf32> to vector<8x32xf32>
    %94 = arith.addf %92, %93 : vector<8x32xf32>
    %95 = arith.negf %94 : vector<8x32xf32>
    %96 = math.exp %95 : vector<8x32xf32>
    %cst_47 = arith.constant 1.000000e+00 : f32
    %97 = vector.broadcast %cst_47 : f32 to vector<8x32xf32>
    %98 = arith.addf %97, %96 : vector<8x32xf32>
    %99 = arith.divf %97, %98 : vector<8x32xf32>
    %100 = vector.extract_strided_slice %78 {offsets = [0, 64], sizes = [8, 32], strides = [1, 1]} : vector<8x96xf32> to vector<8x32xf32>
    %101 = vector.extract_strided_slice %83 {offsets = [0, 64], sizes = [8, 32], strides = [1, 1]} : vector<8x96xf32> to vector<8x32xf32>
    %102 = arith.mulf %91, %101 : vector<8x32xf32>
    %103 = arith.addf %100, %102 : vector<8x32xf32>
    %104 = math.tanh %103 : vector<8x32xf32>
    %cst_48 = arith.constant 1.000000e+00 : f32
    %105 = vector.broadcast %cst_48 : f32 to vector<8x32xf32>
    %106 = arith.subf %105, %99 : vector<8x32xf32>
    %107 = arith.mulf %106, %104 : vector<8x32xf32>
    %108 = arith.mulf %99, %4 : vector<8x32xf32>
    %109 = arith.addf %107, %108 : vector<8x32xf32>
    %c0_49 = arith.constant 0 : index
    %c0_50 = arith.constant 0 : index
    %110 = vector.load %arg15[%c0_49, %c0_50] : memref<32x128xf32, #tpu.memory_space<vmem>>, vector<32x128xf32>
    %cst_51 = arith.constant dense<0.000000e+00> : vector<8x128xf32>
    %111 = tpu.matmul %109, %110, %cst_51 {dimension_numbers = #tpu.dot_dimension_numbers<[1], [0], [0], [1], [0, 0, 1, 1], [], []>} : vector<8x32xf32>, vector<32x128xf32>, vector<8x128xf32> -> vector<8x128xf32>
    %c0_52 = arith.constant 0 : index
    %c0_53 = arith.constant 0 : index
    %112 = vector.load %arg16[%c0_52, %c0_53] : memref<1x128xf32, #tpu.memory_space<vmem>>, vector<1x128xf32>
    %113 = vector.broadcast %112 : vector<1x128xf32> to vector<8x128xf32>
    %114 = arith.addf %111, %113 : vector<8x128xf32>
    %cst_54 = arith.constant dense<0xFF800000> : vector<8xf32>
    %115 = vector.multi_reduction <maximumf>, %114, %cst_54 [1] : vector<8x128xf32> to vector<8xf32>
    %116 = vector.shape_cast %115 : vector<8xf32> to vector<8x1xf32>
    %117 = vector.broadcast %116 : vector<8x1xf32> to vector<8x128xf32>
    %118 = arith.subf %114, %117 : vector<8x128xf32>
    %119 = math.exp %118 : vector<8x128xf32>
    %cst_55 = arith.constant dense<0.000000e+00> : vector<8xf32>
    %120 = vector.multi_reduction <add>, %119, %cst_55 [1] : vector<8x128xf32> to vector<8xf32>
    %121 = vector.shape_cast %120 : vector<8xf32> to vector<8x1xf32>
    %122 = math.log %121 : vector<8x1xf32>
    %123 = vector.broadcast %122 : vector<8x1xf32> to vector<8x128xf32>
    %124 = arith.subf %118, %123 : vector<8x128xf32>
    %c0_56 = arith.constant 0 : index
    %c0_57 = arith.constant 0 : index
    %125 = vector.load %arg17[%c0_56, %c0_57] : memref<8x128xf32, #tpu.memory_space<vmem>>, vector<8x128xf32>
    tpu.vector_store %arg17[%c0_56, %c0_57], %124 {strides = array<i32>} : memref<8x128xf32, #tpu.memory_space<vmem>>, vector<8x128xf32>,
    %c0_58 = arith.constant 0 : index
    %c0_59 = arith.constant 0 : index
    %c0_60 = arith.constant 0 : index
    %126 = vector.load %arg18[%c0_58, %c0_59, %c0_60] : memref<2x8x32xf32, #tpu.memory_space<vmem>>, vector<1x8x32xf32>
    %127 = vector.shape_cast %126 : vector<1x8x32xf32> to vector<8x32xf32>
    %128 = vector.shape_cast %73 : vector<8x32xf32> to vector<1x8x32xf32>
    tpu.vector_store %arg18[%c0_58, %c0_59, %c0_60], %128 {strides = array<i32>} : memref<2x8x32xf32, #tpu.memory_space<vmem>>, vector<1x8x32xf32>,
    %c1_61 = arith.constant 1 : index
    %c0_62 = arith.constant 0 : index
    %c0_63 = arith.constant 0 : index
    %129 = vector.load %arg18[%c1_61, %c0_62, %c0_63] : memref<2x8x32xf32, #tpu.memory_space<vmem>>, vector<1x8x32xf32>
    %130 = vector.shape_cast %129 : vector<1x8x32xf32> to vector<8x32xf32>
    %131 = vector.shape_cast %109 : vector<8x32xf32> to vector<1x8x32xf32>
    tpu.vector_store %arg18[%c1_61, %c0_62, %c0_63], %131 {strides = array<i32>} : memref<2x8x32xf32, #tpu.memory_space<vmem>>, vector<1x8x32xf32>,
    return
  }
}

</mosaic_0001>

<bundles_post_ra>
// kernel: tpu_custom_call.1
= control target key start
LH: loop header
LB: loop body
LE: loop exit
PB: predicated region body
PF: predicated region fallthrough
CT: control target
= control target key end

     0   :  { %s2613_s0 = inlined_call_operand.vmem [shape: f32[8,32], index: 0, kind: input, shape index: {}]   ;;  %s2614_s1 = inlined_call_operand.hbm [shape: f32[2,8,32], index: 1, kind: input, shape index: {}, may-alias: {1,18}]   ;;  %s2615_s2 = inlined_call_operand.hbm [shape: f32[8,8,32], index: 2, kind: input, shape index: {}]   ;;  %s2616_s3 = inlined_call_operand.vmem [shape: f32[32,32], index: 3, kind: input, shape index: {}]   ;;  %s2617_s4 = inlined_call_operand.hbm [shape: f32[32,32], index: 4, kind: input, shape index: {}]   ;;  %s2618_s5 = inlined_call_operand.vmem [shape: f32[1,32], index: 5, kind: input, shape index: {}]   ;;  %s2619_s6 = inlined_call_operand.vmem [shape: f32[1,1,32], index: 6, kind: input, shape index: {}]   ;;  %s2620_s7 = inlined_call_operand.hbm [shape: f32[64,96], index: 7, kind: input, shape index: {}]   ;;  %s2621_s8 = inlined_call_operand.hbm [shape: f32[32,96], index: 8, kind: input, shape index: {}]   ;;  %s2622_s9 = inlined_call_operand.vmem [shape: f32[1,96], index: 9, kind: input, shape index: {}]   ;;  %s2623_s10 = inlined_call_operand.hbm [shape: f32[1,96], index: 10, kind: input, shape index: {}]   ;;  %s2624_s11 = inlined_call_operand.hbm [shape: f32[32,96], index: 11, kind: input, shape index: {}]   ;;  %s2625_s12 = inlined_call_operand.hbm [shape: f32[32,96], index: 12, kind: input, shape index: {}]   ;;  %s2626_s13 = inlined_call_operand.hbm [shape: f32[1,96], index: 13, kind: input, shape index: {}]   ;;  %s2627_s14 = inlined_call_operand.hbm [shape: f32[1,96], index: 14, kind: input, shape index: {}]   ;;  %s2628_s15 = inlined_call_operand.hbm [shape: f32[32,128], index: 15, kind: input, shape index: {}]   ;;  %s2629_s16 = inlined_call_operand.hbm [shape: f32[1,128], index: 16, kind: input, shape index: {}]   ;;  %s2630_s17 = inlined_call_operand.hbm [shape: f32[8,128], index: 17, kind: output, shape index: {0}]   ;;  %s2631_s18 = inlined_call_operand.hbm [shape: f32[2,8,32], index: 18, kind: output, shape index: {1}, may-alias: {1,18}]  }
   0x1   :  { %2632 = sst [smem:[#allocation34_spill]] %s2613_s0 }
   0x2   :  { %2633 = sst [smem:[#allocation35_spill]] %s2614_s1 }
   0x3   :  { %2634 = sst [smem:[#allocation36_spill]] %s2615_s2 }
   0x4   :  { %24 = vsyncpa [#allocation3], 0 }
   0x5   :  { %25 = vsyncpa [#allocation6], 0 }
   0x6   :  { %26 = vsyncpa [#allocation9], 0 }
   0x7   :  { %27 = vsyncpa [#allocation12], 0 }
   0x8   :  { %28 = vsyncpa [#allocation15], 0 }
   0x9   :  { %29 = vsyncpa [#allocation18], 0 }
   0xa   :  { %30 = vsyncpa [#allocation21], 0 }
   0xb   :  { %31 = vsyncpa [#allocation4], 0 }
   0xc   :  { %32 = vsyncpa [#allocation24], 0  ;;  %s2191_s27 = smov [#allocation5]   ;;  %s2192_s29 = smov [#allocation8]  }
   0xd   :  { %s52_s28 = sshll.u32 %s2191_s27, 4  ;;  %s82_s30 = sshll.u32 %s2192_s29, 4  ;;  %s53_s28 = int_to_ptr.vmem [resolvable:$true] %s52_s28  ;;  %s83_s30 = int_to_ptr.vmem [resolvable:$true] %s82_s30 }
   0xe   :  { %s1901_s0 = scalar_lea.vmem %s53_s28, 1024  ;;  %p1906_p1 = scmp.lt.s32.totalorder %s53_s28, %s53_s28 }
   0xf   :  { %p1902_p0 = scmp.ne.s32.totalorder %s53_s28, %s1901_s0  ;;  %p1907_p2 = scmp.lt.s32.totalorder %s1901_s0, %s1901_s0 }
  0x11   :  { %p1908_p3 = por %p1907_p2, %p1906_p1 }
  0x13   :  { %p1909_p4 = pnand %p1908_p3, %p1902_p0 }
  0x15   :  { %1912 = shalt.err (!%p1909_p4)
}
  0x16   :  { %s2193_s19 = smov 128   ;;  %s2194_s1 = smov 8  }
  0x17   :  { %s2635_s22 = sld [smem:[#allocation36_spill]]  ;;  %s1921_s2 = scalar_lea.vmem %s83_s30, 1024 }
  0x18   :  { %p1922_p5 = scmp.ne.s32.totalorder %s83_s30, %s1921_s2  ;;  %p1926_p6 = scmp.lt.s32.totalorder %s83_s30, %s83_s30 }
  0x19   :  { %p1927_p7 = scmp.lt.s32.totalorder %s1921_s2, %s1921_s2 }
  0x1b   :  { %p1928_p8 = por %p1927_p7, %p1926_p6 }
  0x1d   :  { %58 = dma.hbm_to_vmem [thread:$0]  %s2635_s22, 1024, %s53_s28, [#allocation6], %s2193_s19, %s2193_s19, %s2194_s1  }
  0x1e   :  { %p1929_p9 = pnand %p1928_p8, %p1922_p5 }
  0x20   :  { %1932 = shalt.err (!%p1929_p9)
}
  0x21   :  { %88 = dma.hbm_to_vmem [thread:$0]  %s2620_s7, 1024, %s83_s30, [#allocation9], %s2193_s19, %s2193_s19, %s2194_s1  }
  0x22   :  { %s2195_s25 = smov [#allocation11]   ;;  %s2196_s27 = smov [#allocation14]  }
  0x23   :  { %s109_s26 = sshll.u32 %s2195_s25, 4  ;;  %s130_s29 = sshll.u32 %s2196_s27, 4  ;;  %s110_s26 = int_to_ptr.vmem [resolvable:$true] %s109_s26  ;;  %s131_s29 = int_to_ptr.vmem [resolvable:$true] %s130_s29 }
  0x24   :  { %s1941_s28 = scalar_lea.vmem %s110_s26, 16  ;;  %s1945_s0 = scalar_lea.vmem %s110_s26, 32 }
  0x25   :  { %p1942_p10 = scmp.ne.s32.totalorder %s110_s26, %s1941_s28  ;;  %p1946_p11 = scmp.lt.s32.totalorder %s110_s26, %s110_s26 }
  0x26   :  { %p1947_p12 = scmp.lt.s32.totalorder %s1945_s0, %s1941_s28 }
  0x28   :  { %p1948_p13 = por %p1947_p12, %p1946_p11 }
  0x2a   :  { %p1949_p0 = pnand %p1948_p13, %p1942_p10 }
  0x2c   :  { %1952 = shalt.err (!%p1949_p0)
}
  0x2d   :  { %112 = dma.hbm_to_vmem [thread:$0]  %s2623_s10, 16, %s110_s26, [#allocation12]  }
  0x2e   :  { %s1961_s22 = scalar_lea.vmem %s131_s29, 512  ;;  %p1966_p2 = scmp.lt.s32.totalorder %s131_s29, %s131_s29 }
  0x2f   :  { %p1962_p1 = scmp.ne.s32.totalorder %s131_s29, %s1961_s22  ;;  %p1967_p3 = scmp.lt.s32.totalorder %s1961_s22, %s1961_s22 }
  0x31   :  { %p1968_p4 = por %p1967_p3, %p1966_p2 }
  0x33   :  { %p1969_p5 = pnand %p1968_p4, %p1962_p1 }
  0x35   :  { %1972 = shalt.err (!%p1969_p5)
}
  0x36   :  { %136 = dma.hbm_to_vmem [thread:$0]  %s2625_s12, 512, %s131_s29, [#allocation15], %s2193_s19, %s2193_s19, %s2194_s1  }
  0x37   :  { %s2197_s2 = smov [#allocation17]   ;;  %s2198_s24 = smov [#allocation2]  }
  0x38   :  { %s153_s23 = sshll.u32 %s2197_s2, 4  ;;  %s40_s25 = sshll.u32 %s2198_s24, 4  ;;  %s154_s23 = int_to_ptr.vmem [resolvable:$true] %s153_s23  ;;  %s41_s25 = int_to_ptr.vmem [resolvable:$true] %s40_s25 }
  0x39   :  { %s1981_s10 = scalar_lea.vmem %s154_s23, 16  ;;  %s1985_s26 = scalar_lea.vmem %s154_s23, 32 }
  0x3a   :  { %p1982_p6 = scmp.ne.s32.totalorder %s154_s23, %s1981_s10  ;;  %p1986_p7 = scmp.lt.s32.totalorder %s154_s23, %s154_s23 }
  0x3b   :  { %p1987_p8 = scmp.lt.s32.totalorder %s1985_s26, %s1981_s10 }
  0x3d   :  { %p1988_p9 = por %p1987_p8, %p1986_p7 }
  0x3f   :  { %p1989_p10 = pnand %p1988_p9, %p1982_p6 }
  0x41   :  { %1992 = shalt.err (!%p1989_p10)
}
  0x42   :  { %156 = dma.hbm_to_vmem [thread:$0]  %s2627_s14, 16, %s154_s23, [#allocation18]  }
  0x43   :  { %s2001_s0 = scalar_lea.vmem %s41_s25, 256  ;;  %p2006_p12 = scmp.lt.s32.totalorder %s41_s25, %s41_s25 }
  0x44   :  { %p2002_p11 = scmp.ne.s32.totalorder %s41_s25, %s2001_s0  ;;  %p2007_p13 = scmp.lt.s32.totalorder %s2001_s0, %s2001_s0 }
  0x46   :  { %p2008_p0 = por %p2007_p13, %p2006_p12 }
  0x48   :  { %p2009_p1 = pnand %p2008_p0, %p2002_p11 }
  0x4a   :  { %2012 = shalt.err (!%p2009_p1)
}
  0x4b   :  { %s2636_s20 = sld [smem:[#allocation35_spill]]  ;;  %s2199_s21 = smov [#allocation7]  }
  0x4c   :  { %s66_s22 = sshll.u32 %s2199_s21, 4  ;;  %s2200_s7 = smov [#allocation10]   ;;  %s67_s22 = int_to_ptr.vmem [resolvable:$true] %s66_s22 }
  0x4d   :  { %s94_s30 = sshll.u32 %s2200_s7, 4  ;;  %s2021_s14 = scalar_lea.vmem %s67_s22, 512  ;;  %s95_s30 = int_to_ptr.vmem [resolvable:$true] %s94_s30 }
  0x4e   :  { %p2022_p2 = scmp.ne.s32.totalorder %s67_s22, %s2021_s14  ;;  %p2026_p3 = scmp.lt.s32.totalorder %s67_s22, %s67_s22 }
  0x4f   :  { %p2027_p4 = scmp.lt.s32.totalorder %s2021_s14, %s2021_s14 }
  0x51   :  { %46 = dma.hbm_to_vmem [thread:$0]  %s2636_s20, 256, %s41_s25, [#allocation3], %s2193_s19, %s2193_s19, %s2194_s1  }
  0x52   :  { %p2028_p5 = por %p2027_p4, %p2026_p3 }
  0x54   :  { %p2029_p6 = pnand %p2028_p5, %p2022_p2 }
  0x56   :  { %2032 = shalt.err (!%p2029_p6)
}
  0x57   :  { %72 = dma.hbm_to_vmem [thread:$0]  %s2617_s4, 512, %s67_s22, [#allocation6], %s2193_s19, %s2193_s19, %s2194_s1  }
  0x58   :  { %s2041_s24 = scalar_lea.vmem %s95_s30, 512  ;;  %p2046_p8 = scmp.lt.s32.totalorder %s95_s30, %s95_s30 }
  0x59   :  { %p2042_p7 = scmp.ne.s32.totalorder %s95_s30, %s2041_s24  ;;  %p2047_p9 = scmp.lt.s32.totalorder %s2041_s24, %s2041_s24 }
  0x5b   :  { %p2048_p10 = por %p2047_p9, %p2046_p8 }
  0x5d   :  { %p2049_p11 = pnand %p2048_p10, %p2042_p7 }
  0x5f   :  { %2052 = shalt.err (!%p2049_p11)
}
  0x60   :  { %100 = dma.hbm_to_vmem [thread:$0]  %s2621_s8, 512, %s95_s30, [#allocation9], %s2193_s19, %s2193_s19, %s2194_s1  }
  0x61   :  { %s2201_s26 = smov [#allocation13]   ;;  %s2202_s28 = smov [#allocation16]  }
  0x62   :  { %s118_s27 = sshll.u32 %s2201_s26, 4  ;;  %s143_s0 = sshll.u32 %s2202_s28, 4  ;;  %s119_s27 = int_to_ptr.vmem [resolvable:$true] %s118_s27  ;;  %s144_s0 = int_to_ptr.vmem [resolvable:$true] %s143_s0 }
  0x63   :  { %s2061_s4 = scalar_lea.vmem %s119_s27, 512  ;;  %p2066_p13 = scmp.lt.s32.totalorder %s119_s27, %s119_s27 }
  0x64   :  { %p2062_p12 = scmp.ne.s32.totalorder %s119_s27, %s2061_s4  ;;  %p2067_p0 = scmp.lt.s32.totalorder %s2061_s4, %s2061_s4 }
  0x66   :  { %p2068_p1 = por %p2067_p0, %p2066_p13 }
  0x68   :  { %p2069_p2 = pnand %p2068_p1, %p2062_p12 }
  0x6a   :  { %2072 = shalt.err (!%p2069_p2)
}
  0x6b   :  { %124 = dma.hbm_to_vmem [thread:$0]  %s2624_s11, 512, %s119_s27, [#allocation12], %s2193_s19, %s2193_s19, %s2194_s1  }
  0x6c   :  { %s2081_s8 = scalar_lea.vmem %s144_s0, 16  ;;  %s2085_s20 = scalar_lea.vmem %s144_s0, 32 }
  0x6d   :  { %p2082_p3 = scmp.ne.s32.totalorder %s144_s0, %s2081_s8  ;;  %p2086_p4 = scmp.lt.s32.totalorder %s144_s0, %s144_s0 }
  0x6e   :  { %p2087_p5 = scmp.lt.s32.totalorder %s2085_s20, %s2081_s8 }
  0x70   :  { %p2088_p6 = por %p2087_p5, %p2086_p4 }
  0x72   :  { %p2089_p7 = pnand %p2088_p6, %p2082_p3 }
  0x74   :  { %2092 = shalt.err (!%p2089_p7)
}
  0x75   :  { %146 = dma.hbm_to_vmem [thread:$0]  %s2626_s13, 16, %s144_s0, [#allocation15]  }
  0x76   :  { %s2203_s7 = smov [#allocation19]   ;;  %s2204_s14 = smov [#allocation20]  }
  0x77   :  { %s162_s30 = sshll.u32 %s2203_s7, 4  ;;  %s175_s2 = sshll.u32 %s2204_s14, 4  ;;  %s163_s30 = int_to_ptr.vmem [resolvable:$true] %s162_s30  ;;  %s176_s2 = int_to_ptr.vmem [resolvable:$true] %s175_s2 }
  0x78   :  { %s2101_s23 = scalar_lea.vmem %s163_s30, 512  ;;  %p2106_p9 = scmp.lt.s32.totalorder %s163_s30, %s163_s30 }
  0x79   :  { %p2102_p8 = scmp.ne.s32.totalorder %s163_s30, %s2101_s23  ;;  %p2107_p10 = scmp.lt.s32.totalorder %s2101_s23, %s2101_s23 }
  0x7b   :  { %p2108_p11 = por %p2107_p10, %p2106_p9 }
  0x7d   :  { %p2109_p12 = pnand %p2108_p11, %p2102_p8 }
  0x7f   :  { %2112 = shalt.err (!%p2109_p12)
}
  0x80   :  { %168 = dma.hbm_to_vmem [thread:$0]  %s2628_s15, 512, %s163_s30, [#allocation18], %s2193_s19, %s2193_s19, %s2194_s1  }
  0x81   :  { %s2121_s13 = scalar_lea.vmem %s176_s2, 16  ;;  %s2125_s25 = scalar_lea.vmem %s176_s2, 32 }
  0x82   :  { %p2122_p13 = scmp.ne.s32.totalorder %s176_s2, %s2121_s13  ;;  %p2126_p0 = scmp.lt.s32.totalorder %s176_s2, %s176_s2 }
  0x83   :  { %p2127_p1 = scmp.lt.s32.totalorder %s2125_s25, %s2121_s13 }
  0x85   :  { %p2128_p2 = por %p2127_p1, %p2126_p0 }
  0x87   :  { %p2129_p3 = pnand %p2128_p2, %p2122_p13 }
  0x89   :  { %2132 = shalt.err (!%p2129_p3)
}
  0x8a   :  { %178 = dma.hbm_to_vmem [thread:$0]  %s2629_s16, 16, %s176_s2, [#allocation21]  }
  0x8b   :  { %2173 = dma.done.wait [#allocation3], 256  }
  0x8c   :  { %2174 = vsyncadd [#allocation3], 4294967040 }
  0x8d   :  { %2175 = dma.done.wait [#allocation6], 1536  }
  0x8e   :  { %2176 = vsyncadd [#allocation6], 4294965760 }
  0x8f   :  { %2177 = dma.done.wait [#allocation9], 1536  }
  0x90   :  { %2178 = vsyncadd [#allocation9], 4294965760 }
  0x91   :  { %2179 = dma.done.wait [#allocation12], 528  }
  0x92   :  { %2180 = vsyncadd [#allocation12], 4294966768 }
  0x93   :  { %2181 = dma.done.wait [#allocation15], 528  }
  0x94   :  { %2182 = vsyncadd [#allocation15], 4294966768 }
  0x95   :  { %2183 = dma.done.wait [#allocation18], 528  }
  0x96   :  { %2184 = vsyncadd [#allocation18], 4294966768 }
  0x97   :  { %2185 = dma.done.wait [#allocation21], 16  }
  0x98   :  { %2186 = vsyncadd [#allocation21], 4294967280  ;;  %v2205_v0 = vmov 0.0   ;;  %vm2206_vm0 = vmmov 0   ;;  %v231_v1 = vld [vmem:[%s2616_s3 + $0x18] sm:$0xff]  ;;  %v2376_v2 = vld [vmem:[#allocation7 + $0x18] sm:$0xff] }
  0x99   :  { %1660 = vmatprep.subr.mxu0 %v2205_v0  ;;  %1671 = vmatprep.subr.mxu1 %v2205_v0  ;;  %v230_v3 = vld [vmem:[%s2616_s3 + $0x10] sm:$0xff]  ;;  %v2382_v4 = vld [vmem:[#allocation7 + $0x10] sm:$0xff]  ;;  %v229_v5 = vld [vmem:[%s2616_s3 + $0x8] sm:$0xff]  ;;  %vm239_vm1 = vcmask 261120   ;;  %s2637_s30 = sld [smem:[#allocation34_spill]]  ;;  %vm1038_vm2 = vcmask 523264  }
  0x9a   :  { %1668 = vmatprep.mubr.msk.f32.mxu0 %vm2206_vm0, %v2205_v0  ;;  %1679 = vmatprep.mubr.msk.f32.mxu1 %vm2206_vm0, %v2205_v0  ;;  %v2389_v6 = vld [vmem:[#allocation7 + $0x8] sm:$0xff]  ;;  %v2391_v7 = vld [vmem:[#allocation2] sm:$0xff]  ;;  %v2394_v8 = vld [vmem:[#allocation2 + $0x8] sm:$0xff]  ;;  %s2210_s23 = smov [#allocation23]  }
  0x9b   :  { %1661 = vmatpush3.msra.mxu0 %v231_v1  ;;  %1672 = vmatpush3.msra.mxu1 %v2376_v2  ;;  %v228_v9 = vld [vmem:[%s2616_s3] sm:$0xff]  ;;  %v2401_v10 = vld [vmem:[#allocation7] sm:$0xff]  ;;  %v227_v11 = vadd.f32 %v2394_v8, %v2391_v7  ;;  %v2428_v13 = vld [vmem:[#allocation5 + $0x8] sm:$0xff]  ;;  %s1541_s11 = sshll.u32 %s2210_s23, 4  ;;  %s1542_s11 = int_to_ptr.vmem [resolvable:$true] %s1541_s11 }
  0x9c   :  { %1662 = vmatprep.subr.mxu0 %v2205_v0  ;;  %1673 = vmatprep.subr.mxu1 %v2205_v0  ;;  %v2408_v12 = vld [vmem:[#allocation5] sm:$0xff]  ;;  %v2430_v14 = vld [vmem:[#allocation5 + $0x10] sm:$0xff]  ;;  %v2456_v15 = vld [vmem:[#allocation5 + $0x18] sm:$0xff]  ;;  %s2133_s24 = scalar_lea.vmem %s1542_s11, 256  ;;  %p2138_p5 = scmp.lt.s32.totalorder %s1542_s11, %s1542_s11 }
  0x9d   :  { %1663 = vmatpush3.msra.mxu0 %v230_v3  ;;  %1674 = vmatpush3.msra.mxu1 %v2382_v4  ;;  %v2458_v16 = vld [vmem:[#allocation5 + $0x20] sm:$0xff]  ;;  %v2484_v17 = vld [vmem:[#allocation5 + $0x28] sm:$0xff]  ;;  %v2486_v18 = vld [vmem:[#allocation5 + $0x30] sm:$0xff]  ;;  %p2134_p4 = scmp.ne.s32.totalorder %s1542_s11, %s2133_s24  ;;  %p2139_p6 = scmp.lt.s32.totalorder %s2133_s24, %s2133_s24 }
  0x9e   :  { %1664 = vmatprep.subr.mxu0 %v2205_v0  ;;  %1675 = vmatprep.subr.mxu1 %v2205_v0  ;;  %v2509_v19 = vld [vmem:[#allocation5 + $0x38] sm:$0xff]  ;;  %v1563_v20 = vld [vmem:[%s2618_s5] ss:$0 sm:$0xff]  ;;  %s2207_s5 = smov 32  }
  0x9f   :  { %1665 = vmatpush3.msra.mxu0 %v229_v5  ;;  %1676 = vmatpush3.msra.mxu1 %v2389_v6  ;;  %v1573_v33 = vld [vmem:[%s2619_s6] ss:$0 sm:$0xff]  ;;  %s2208_s6 = smov 64   ;;  %p2140_p7 = por %p2139_p6, %p2138_p5 }
  0xa0   :  { %1666 = vmatprep.subr.mxu0 %v2205_v0  ;;  %1677 = vmatprep.subr.mxu1 %v2205_v0 }
  0xa1   :  { %1667 = vmatpush3.msra.mxu0 %v228_v9  ;;  %1678 = vmatpush3.msra.mxu1 %v2401_v10  ;;  %p2141_p8 = pnand %p2140_p7, %p2134_p4 }
  0xa2   :  { %1669 = vmatmul.mubr.msk.f32.vlgmr.msra.gmra.mxu0 %vm239_vm1, %v227_v11  ;;  %1682 = vmatprep.subr.mxu0 %v2205_v0 }
  0xa3   :  { %1693 = vmatprep.subr.mxu1 %v2205_v0  ;;  %1680 = vmatmul.mubr.msk.f32.vlgmr.msra.gmra.mxu1 %vm239_vm1, %v2408_v12 }
  0xa4   :  { %1683 = vmatpush3.msra.mxu0 %v2376_v2  ;;  %1694 = vmatpush3.msra.mxu1 %v2376_v2 }
  0xa5   :  { %1684 = vmatprep.subr.mxu0 %v2205_v0  ;;  %1695 = vmatprep.subr.mxu1 %v2205_v0 }
  0xa6   :  { %1685 = vmatpush3.msra.mxu0 %v2382_v4  ;;  %1696 = vmatpush3.msra.mxu1 %v2382_v4 }
  0xa7   :  { %1686 = vmatprep.subr.mxu0 %v2205_v0  ;;  %1697 = vmatprep.subr.mxu1 %v2205_v0 }
  0xa8   :  { %1687 = vmatpush3.msra.mxu0 %v2389_v6  ;;  %1698 = vmatpush3.msra.mxu1 %v2389_v6 }
  0xa9   :  { %1688 = vmatprep.subr.mxu0 %v2205_v0  ;;  %1699 = vmatprep.subr.mxu1 %v2205_v0 }
  0xaa   :  { %1689 = vmatpush3.msra.mxu0 %v2401_v10  ;;  %1690 = vmatprep.mubr.msk.f32.mxu0 %vm2206_vm0, %v2205_v0 }
  0xab   :  { %1700 = vmatpush3.msra.mxu1 %v2401_v10  ;;  %1701 = vmatprep.mubr.msk.f32.mxu1 %vm2206_vm0, %v2205_v0 }
  0xac   :  { %1691 = vmatmul.mubr.msk.f32.vlgmr.msra.gmra.mxu0 %vm239_vm1, %v2428_v13  ;;  %1702 = vmatmul.mubr.msk.f32.vlgmr.msra.gmra.mxu1 %vm239_vm1, %v2430_v14 }
  0xad   :  { %1704 = vmatprep.subr.mxu0 %v2205_v0  ;;  %1715 = vmatprep.subr.mxu1 %v2205_v0 }
  0xae   :  { %1705 = vmatpush3.msra.mxu0 %v2376_v2  ;;  %1716 = vmatpush3.msra.mxu1 %v2376_v2 }
  0xaf   :  { %1706 = vmatprep.subr.mxu0 %v2205_v0  ;;  %1717 = vmatprep.subr.mxu1 %v2205_v0 }
  0xb0   :  { %1707 = vmatpush3.msra.mxu0 %v2382_v4  ;;  %1718 = vmatpush3.msra.mxu1 %v2382_v4 }
  0xb1   :  { %1708 = vmatprep.subr.mxu0 %v2205_v0  ;;  %1719 = vmatprep.subr.mxu1 %v2205_v0 }
  0xb2   :  { %1709 = vmatpush3.msra.mxu0 %v2389_v6  ;;  %1720 = vmatpush3.msra.mxu1 %v2389_v6 }
  0xb3   :  { %1710 = vmatprep.subr.mxu0 %v2205_v0  ;;  %1721 = vmatprep.subr.mxu1 %v2205_v0 }
  0xb4   :  { %1711 = vmatpush3.msra.mxu0 %v2401_v10  ;;  %1712 = vmatprep.mubr.msk.f32.mxu0 %vm2206_vm0, %v2205_v0 }
  0xb5   :  { %1722 = vmatpush3.msra.mxu1 %v2401_v10  ;;  %1723 = vmatprep.mubr.msk.f32.mxu1 %vm2206_vm0, %v2205_v0 }
  0xb6   :  { %1713 = vmatmul.mubr.msk.f32.vlgmr.msra.gmra.mxu0 %vm239_vm1, %v2456_v15  ;;  %1724 = vmatmul.mubr.msk.f32.vlgmr.msra.gmra.mxu1 %vm239_vm1, %v2458_v16 }
  0xb7   :  { %1726 = vmatprep.subr.mxu0 %v2205_v0  ;;  %1737 = vmatprep.subr.mxu1 %v2205_v0 }
  0xb8   :  { %1727 = vmatpush3.msra.mxu0 %v2376_v2  ;;  %1738 = vmatpush3.msra.mxu1 %v2376_v2 }
  0xb9   :  { %1728 = vmatprep.subr.mxu0 %v2205_v0  ;;  %1739 = vmatprep.subr.mxu1 %v2205_v0 }
  0xba   :  { %1729 = vmatpush3.msra.mxu0 %v2382_v4  ;;  %1740 = vmatpush3.msra.mxu1 %v2382_v4 }
  0xbb   :  { %1730 = vmatprep.subr.mxu0 %v2205_v0  ;;  %1741 = vmatprep.subr.mxu1 %v2205_v0 }
  0xbc   :  { %1731 = vmatpush3.msra.mxu0 %v2389_v6  ;;  %1742 = vmatpush3.msra.mxu1 %v2389_v6 }
  0xbd   :  { %1732 = vmatprep.subr.mxu0 %v2205_v0  ;;  %1743 = vmatprep.subr.mxu1 %v2205_v0 }
  0xbe   :  { %1733 = vmatpush3.msra.mxu0 %v2401_v10  ;;  %1734 = vmatprep.mubr.msk.f32.mxu0 %vm2206_vm0, %v2205_v0 }
  0xbf   :  { %1744 = vmatpush3.msra.mxu1 %v2401_v10  ;;  %1745 = vmatprep.mubr.msk.f32.mxu1 %vm2206_vm0, %v2205_v0 }
  0xc0   :  { %1735 = vmatmul.mubr.msk.f32.vlgmr.msra.gmra.mxu0 %vm239_vm1, %v2484_v17  ;;  %1746 = vmatmul.mubr.msk.f32.vlgmr.msra.gmra.mxu1 %vm239_vm1, %v2486_v18 }
  0xc1   :  { %1748 = vmatprep.subr.mxu0 %v2205_v0  ;;  %1756 = vmatprep.mubr.msk.f32.mxu0 %vm2206_vm0, %v2205_v0 }
  0xc2   :  { %1749 = vmatpush3.msra.mxu0 %v2376_v2  ;;  %1759 = vmatprep.subr.mxu1 %v2205_v0 }
  0xc3   :  { %1750 = vmatprep.subr.mxu0 %v2205_v0  ;;  %1775 = vmatprep.mubr.msk.f32.mxu1 %vm2206_vm0, %v2205_v0 }
  0xc4   :  { %1751 = vmatpush3.msra.mxu0 %v2382_v4 }
  0xc5   :  { %1752 = vmatprep.subr.mxu0 %v2205_v0 }
  0xc6   :  { %1753 = vmatpush3.msra.mxu0 %v2389_v6 }
  0xc7   :  { %1754 = vmatprep.subr.mxu0 %v2205_v0 }
  0xc8   :  { %1755 = vmatpush3.msra.mxu0 %v2401_v10 }
  0xc9   :  { %1757 = vmatmul.mubr.msk.f32.vlgmr.msra.gmra.mxu0 %vm239_vm1, %v2509_v19  ;;  %1778 = vmatprep.subr.mxu0 %v2205_v0 }
  0xca   :  { %1786 = vmatprep.mubr.msk.f32.mxu0 %vm2206_vm0, %v2205_v0 }
 0x162   :  { %v309_v21 = vpop.f32.mrf.mxu0 }
 0x163   :  { %v310_v22 = vadd.f32 %v1563_v20, %v309_v21  ;;  %v386_v23 = vpop.f32.mrf.mxu1  ;;  %v1115_v20 = vld [vmem:[#allocation10 + $0x18] sm:$0xff]  ;;  %v1114_v21 = vld [vmem:[#allocation10 + $0x10] sm:$0xff] }
 0x164   :  { %v1670_v24 = vpop.f32.mrf.mxu0  ;;  %1779 = vmatpush3.msra.mxu0 %v1115_v20 }
 0x165   :  { %v387_v25 = vadd.f32 %v386_v23, %v310_v22  ;;  %v1681_v26 = vpop.f32.mrf.mxu1  ;;  %v1029_v23 = vld [vmem:[#allocation8 + $0x30] sm:$0xff]  ;;  %1780 = vmatprep.subr.mxu0 %v2205_v0  ;;  %v1113_v24 = vld [vmem:[#allocation10 + $0x8] sm:$0xff] }
 0x166   :  { %1781 = vmatpush3.msra.mxu0 %v1114_v21  ;;  %v1112_v26 = vld [vmem:[#allocation10] sm:$0xff] }
 0x167   :  { %1843 = vtanh.f32 %v387_v25  ;;  %v1028_v25 = vld [vmem:[#allocation8 + $0x28] sm:$0xff]  ;;  %1782 = vmatprep.subr.mxu0 %v2205_v0 }
 0x168   :  { %1783 = vmatpush3.msra.mxu0 %v1113_v24 }
 0x169   :  { %1784 = vmatprep.subr.mxu0 %v2205_v0 }
 0x16a   :  { %1785 = vmatpush3.msra.mxu0 %v1112_v26 }
 0x16b   :  { %1787 = vmatmul.mubr.msk.f32.vlgmr.msra.gmra.mxu0 %vm239_vm1, %v2391_v7  ;;  %1789 = vmatprep.subr.mxu0 %v2205_v0 }
 0x16c   :  { %v459_v27 = vpop.f32.mrf.mxu0  ;;  %v532_v28 = vpop.f32.mrf.mxu1  ;;  %1797 = vmatprep.mubr.msk.f32.mxu0 %vm2206_vm0, %v2205_v0 }
 0x16d   :  { %v460_v29 = vadd.f32 %v459_v27, %v310_v22  ;;  %v533_v30 = vadd.f32 %v532_v28, %v310_v22  ;;  %v1027_v27 = vld [vmem:[#allocation8 + $0x20] sm:$0xff]  ;;  %v1026_v28 = vld [vmem:[#allocation8 + $0x18] sm:$0xff] }
 0x16e   :  { %v1692_v31 = vpop.f32.mrf.mxu0  ;;  %v1703_v32 = vpop.f32.mrf.mxu1 }
 0x16f   :  { %1845 = vtanh.f32 %v460_v29  ;;  %v1025_v29 = vld [vmem:[#allocation8 + $0x10] sm:$0xff] }
 0x170   :  { %1847 = vtanh.f32 %v533_v30  ;;  %v1024_v30 = vld [vmem:[#allocation8 + $0x8] sm:$0xff] }
 0x174   :  { %v1844_v34 = vpop.eup %1843 }
 0x175   :  { %v916_v35 = vmul.f32 %v1844_v34, %v1573_v33 }
 0x176   :  { %v605_v36 = vpop.f32.mrf.mxu0  ;;  %v678_v37 = vpop.f32.mrf.mxu1 }
 0x177   :  { %v606_v38 = vadd.f32 %v605_v36, %v310_v22  ;;  %v679_v39 = vadd.f32 %v678_v37, %v310_v22  ;;  %v924_v40 = vsel %vm239_vm1, %v916_v35, 0.0 }
 0x178   :  { %v1714_v41 = vpop.f32.mrf.mxu0  ;;  %v1725_v42 = vpop.f32.mrf.mxu1  ;;  %925 = vadd.xlane.f32.xlu0 %v924_v40 }
 0x179   :  { %1849 = vtanh.f32 %v606_v38 }
 0x17a   :  { %1851 = vtanh.f32 %v679_v39 }
 0x17c   :  { %v1846_v43 = vpop.eup %1845 }
 0x17d   :  { %v1848_v44 = vpop.eup %1847  ;;  %v917_v45 = vmul.f32 %v1846_v43, %v1573_v33 }
 0x17e   :  { %v918_v46 = vmul.f32 %v1848_v44, %v1573_v33 }
 0x17f   :  { %v927_v47 = vsel %vm239_vm1, %v917_v45, 0.0 }
 0x180   :  { %v751_v48 = vpop.f32.mrf.mxu0  ;;  %v824_v49 = vpop.f32.mrf.mxu1  ;;  %v930_v50 = vsel %vm239_vm1, %v918_v46, 0.0  ;;  %928 = vadd.xlane.f32.xlu0 %v927_v47 }
 0x181   :  { %v752_v51 = vadd.f32 %v751_v48, %v310_v22  ;;  %v825_v52 = vadd.f32 %v824_v49, %v310_v22  ;;  %931 = vadd.xlane.f32.xlu1 %v930_v50 }
 0x182   :  { %v1736_v53 = vpop.f32.mrf.mxu0  ;;  %v1747_v54 = vpop.f32.mrf.mxu1 }
 0x183   :  { %1853 = vtanh.f32 %v752_v51 }
 0x184   :  { %1855 = vtanh.f32 %v825_v52 }
 0x186   :  { %v1850_v55 = vpop.eup %1849 }
 0x187   :  { %v1852_v56 = vpop.eup %1851  ;;  %v919_v57 = vmul.f32 %v1850_v55, %v1573_v33 }
 0x188   :  { %v920_v58 = vmul.f32 %v1852_v56, %v1573_v33 }
 0x189   :  { %v897_v59 = vpop.f32.mrf.mxu0  ;;  %v933_v60 = vsel %vm239_vm1, %v919_v57, 0.0 }
 0x18a   :  { %v898_v61 = vadd.f32 %v897_v59, %v310_v22  ;;  %v936_v62 = vsel %vm239_vm1, %v920_v58, 0.0  ;;  %934 = vadd.xlane.f32.xlu1 %v933_v60  ;;  %v1030_v22 = vld [vmem:[#allocation8 + $0x38] sm:$0xff] }
 0x18b   :  { %v1758_v63 = vpop.f32.mrf.mxu0  ;;  %937 = vadd.xlane.f32.xlu0 %v936_v62  ;;  %1760 = vmatpush3.msra.mxu1 %v1030_v22 }
 0x18c   :  { %1857 = vtanh.f32 %v898_v61  ;;  %1761 = vmatprep.subr.mxu1 %v2205_v0 }
 0x18d   :  { %1762 = vmatpush3.msra.mxu1 %v1029_v23 }
 0x18e   :  { %1763 = vmatprep.subr.mxu1 %v2205_v0 }
 0x18f   :  { %1764 = vmatpush3.msra.mxu1 %v1028_v25 }
 0x190   :  { %v1854_v1 = vpop.eup %1853  ;;  %1765 = vmatprep.subr.mxu1 %v2205_v0 }
 0x191   :  { %v1856_v2 = vpop.eup %1855  ;;  %v921_v3 = vmul.f32 %v1854_v1, %v1573_v33  ;;  %1766 = vmatpush3.msra.mxu1 %v1027_v27 }
 0x192   :  { %v922_v4 = vmul.f32 %v1856_v2, %v1573_v33  ;;  %1767 = vmatprep.subr.mxu1 %v2205_v0 }
 0x193   :  { %v939_v5 = vsel %vm239_vm1, %v921_v3, 0.0  ;;  %1768 = vmatpush3.msra.mxu1 %v1026_v28 }
 0x194   :  { %v942_v6 = vsel %vm239_vm1, %v922_v4, 0.0  ;;  %940 = vadd.xlane.f32.xlu1 %v939_v5  ;;  %1769 = vmatprep.subr.mxu1 %v2205_v0 }
 0x195   :  { %943 = vadd.xlane.f32.xlu0 %v942_v6  ;;  %1770 = vmatpush3.msra.mxu1 %v1025_v29 }
 0x196   :  { %1771 = vmatprep.subr.mxu1 %v2205_v0 }
 0x197   :  { %1772 = vmatpush3.msra.mxu1 %v1024_v30 }
 0x198   :  { %1773 = vmatprep.subr.mxu1 %v2205_v0 }
 0x199   :  { %v1858_v9 = vpop.eup %1857 }
 0x19a   :  { %v923_v10 = vmul.f32 %v1858_v9, %v1573_v33 }
 0x19c   :  { %v945_v11 = vsel %vm239_vm1, %v923_v10, 0.0 }
 0x19d   :  { %946 = vadd.xlane.f32.xlu1 %v945_v11 }
 0x201   :  { %v926_v31 = vpop.xlane.xlu0 %925 }
 0x209   :  { %v929_v33 = vpop.xlane.xlu0 %928 }
 0x20a   :  { %v932_v32 = vpop.xlane.xlu1 %931 }
 0x213   :  { %v935_v34 = vpop.xlane.xlu1 %934 }
 0x214   :  { %v938_v35 = vpop.xlane.xlu0 %937 }
 0x215   :  { %v948_v40 = vmax.f32 %v926_v31, %v938_v35 }
 0x21d   :  { %v941_v36 = vpop.xlane.xlu1 %940 }
 0x21e   :  { %v944_v37 = vpop.xlane.xlu0 %943  ;;  %v949_v38 = vmax.f32 %v929_v33, %v941_v36 }
 0x21f   :  { %v950_v41 = vmax.f32 %v932_v32, %v944_v37 }
 0x220   :  { %v952_v43 = vmax.f32 %v948_v40, %v949_v38 }
 0x226   :  { %v947_v39 = vpop.xlane.xlu1 %946 }
 0x227   :  { %v951_v42 = vmax.f32 %v935_v34, %v947_v39 }
 0x229   :  { %v953_v44 = vmax.f32 %v950_v41, %v951_v42  ;;  %v1023_v41 = vld [vmem:[#allocation8] sm:$0xff] }
 0x22a   :  { %1774 = vmatpush3.msra.mxu1 %v1023_v41 }
 0x22b   :  { %v954_v45 = vmax.f32 %v952_v43, %v953_v44  ;;  %1800 = vmatprep.subr.mxu1 %v2205_v0 }
 0x22d   :  { %v955_v46 = vsub.f32 %v926_v31, %v954_v45  ;;  %v956_v47 = vsub.f32 %v929_v33, %v954_v45  ;;  %v957_v48 = vsub.f32 %v932_v32, %v954_v45  ;;  %v958_v49 = vsub.f32 %v935_v34, %v954_v45 }
 0x22e   :  { %v959_v52 = vsub.f32 %v938_v35, %v954_v45  ;;  %v960_v54 = vsub.f32 %v941_v36, %v954_v45  ;;  %v961_v56 = vsub.f32 %v944_v37, %v954_v45  ;;  %v962_v58 = vsub.f32 %v947_v39, %v954_v45 }
 0x22f   :  { %v963_v50 = vmul.f32 1.442695, %v955_v46  ;;  %v965_v51 = vmul.f32 1.442695, %v956_v47  ;;  %v967_v53 = vmul.f32 1.442695, %v957_v48 }
 0x230   :  { %v969_v55 = vmul.f32 1.442695, %v958_v49  ;;  %v971_v57 = vmul.f32 1.442695, %v959_v52  ;;  %v973_v59 = vmul.f32 1.442695, %v960_v54 }
 0x231   :  { %1859 = vpow2.f32 %v963_v50  ;;  %v975_v60 = vmul.f32 1.442695, %v961_v56  ;;  %v977_v61 = vmul.f32 1.442695, %v962_v58 }
 0x232   :  { %1861 = vpow2.f32 %v965_v51  ;;  %v1192_v51 = vpop.f32.mrf.mxu0 }
 0x233   :  { %1863 = vpow2.f32 %v967_v53 }
 0x234   :  { %1865 = vpow2.f32 %v969_v55  ;;  %v1788_v53 = vpop.f32.mrf.mxu0 }
 0x235   :  { %1867 = vpow2.f32 %v971_v57 }
 0x236   :  { %1869 = vpow2.f32 %v973_v59 }
 0x237   :  { %1871 = vpow2.f32 %v975_v60 }
 0x238   :  { %1873 = vpow2.f32 %v977_v61 }
 0x23e   :  { %v1860_v62 = vpop.eup %1859 }
 0x23f   :  { %v1862_v63 = vpop.eup %1861 }
 0x240   :  { %v979_v1 = vadd.f32 %v1862_v63, %v1860_v62  ;;  %v1864_v2 = vpop.eup %1863 }
 0x241   :  { %v1866_v4 = vpop.eup %1865 }
 0x242   :  { %v980_v3 = vadd.f32 %v1864_v2, %v979_v1  ;;  %v1868_v6 = vpop.eup %1867 }
 0x243   :  { %v1870_v10 = vpop.eup %1869 }
 0x244   :  { %v981_v5 = vadd.f32 %v1866_v4, %v980_v3  ;;  %v1872_v20 = vpop.eup %1871 }
 0x245   :  { %v1874_v22 = vpop.eup %1873 }
 0x246   :  { %v982_v9 = vadd.f32 %v1868_v6, %v981_v5  ;;  %v1314_v5 = vld [vmem:[#allocation14 + $0x18] sm:$0xff] }
 0x248   :  { %v983_v11 = vadd.f32 %v1870_v10, %v982_v9  ;;  %v1228_v9 = vld [vmem:[#allocation13 + $0x18] sm:$0xff] }
 0x249   :  { %1790 = vmatpush3.msra.mxu0 %v1228_v9 }
 0x24a   :  { %v984_v21 = vadd.f32 %v1872_v20, %v983_v11  ;;  %v1312_v11 = vld [vmem:[#allocation14 + $0x8] sm:$0xff]  ;;  %1791 = vmatprep.subr.mxu0 %v2205_v0 }
 0x24c   :  { %v985_v23 = vadd.f32 %v1874_v22, %v984_v21  ;;  %v1311_v21 = vld [vmem:[#allocation14] sm:$0xff] }
 0x24e   :  { %1875 = vrcp.f32 %v985_v23 }
 0x25b   :  { %v1876_v24 = vpop.eup %1875 }
 0x25c   :  { %v987_v25 = vmul.f32 %v1876_v24, %v1860_v62  ;;  %v988_v26 = vmul.f32 %v1876_v24, %v1862_v63  ;;  %v989_v27 = vmul.f32 %v1876_v24, %v1864_v2  ;;  %v990_v28 = vmul.f32 %v1876_v24, %v1866_v4 }
 0x25d   :  { %v991_v29 = vmul.f32 %v1876_v24, %v1868_v6  ;;  %v992_v33 = vmul.f32 %v1876_v24, %v1870_v10  ;;  %v993_v38 = vmul.f32 %v1876_v24, %v1872_v20  ;;  %v1313_v6 = vld [vmem:[#allocation14 + $0x10] sm:$0xff]  ;;  %v1226_v20 = vld [vmem:[#allocation13 + $0x8] sm:$0xff] }
 0x25e   :  { %v995_v30 = vmul.f32 %v987_v25, %v2408_v12  ;;  %v996_v31 = vmul.f32 %v988_v26, %v2428_v13  ;;  %v997_v32 = vmul.f32 %v989_v27, %v2430_v14  ;;  %v998_v34 = vmul.f32 %v990_v28, %v2456_v15  ;;  %v1227_v10 = vld [vmem:[#allocation13 + $0x10] sm:$0xff] }
 0x25f   :  { %v999_v39 = vmul.f32 %v991_v29, %v2458_v16  ;;  %v994_v12 = vmul.f32 %v1876_v24, %v1874_v22  ;;  %v1000_v13 = vmul.f32 %v992_v33, %v2484_v17  ;;  %v1001_v43 = vmul.f32 %v993_v38, %v2486_v18  ;;  %v1576_v18 = vld [vmem:[#allocation11] ss:$0 sm:$0xff]  ;;  %1792 = vmatpush3.msra.mxu0 %v1227_v10  ;;  %v1225_v22 = vld [vmem:[#allocation13] sm:$0xff] }
 0x260   :  { %v1003_v35 = vsel %vm239_vm1, %v995_v30, 0.0  ;;  %v1004_v36 = vsel %vm239_vm1, %v996_v31, 0.0  ;;  %v1006_v40 = vsel %vm239_vm1, %v997_v32, 0.0  ;;  %v1008_v14 = vsel %vm239_vm1, %v998_v34, 0.0  ;;  %1793 = vmatprep.subr.mxu0 %v2205_v0  ;;  %v1581_v30 = vld [vmem:[#allocation17] ss:$0 sm:$0xff] }
 0x261   :  { %v1005_v37 = vadd.f32 %v1004_v36, %v1003_v35  ;;  %v1010_v44 = vsel %vm239_vm1, %v999_v39, 0.0  ;;  %v1002_v16 = vmul.f32 %v994_v12, %v2509_v19  ;;  %v1012_v46 = vsel %vm239_vm1, %v1000_v13, 0.0  ;;  %v215_v19 = vld [vmem:[%s2637_s30] sm:$0xff]  ;;  %1794 = vmatpush3.msra.mxu0 %v1226_v20  ;;  %v1579_v35 = vld [vmem:[#allocation16] ss:$0 sm:$0xff] }
 0x262   :  { %v1014_v48 = vsel %vm239_vm1, %v1001_v43, 0.0  ;;  %v1193_v52 = vadd.f32 %v1576_v18, %v1192_v51  ;;  %1795 = vmatprep.subr.mxu0 %v2205_v0 }
 0x263   :  { %v1007_v42 = vadd.f32 %v1006_v40, %v1005_v37  ;;  %v1016_v17 = vsel %vm239_vm1, %v1002_v16, 0.0  ;;  %1796 = vmatpush3.msra.mxu0 %v1225_v22  ;;  %v1425_v16 = vld [vmem:[#allocation19 + $0x8] sm:$0xff] }
 0x264   :  { %1204 = vrot.lane.b32.xlu1 %v1193_v52, %s2208_s6  ;;  %1811 = vmatprep.subr.mxu0 %v2205_v0 }
 0x265   :  { %v1009_v15 = vadd.f32 %v1008_v14, %v1007_v42 }
 0x267   :  { %v1011_v45 = vadd.f32 %v1010_v44, %v1009_v15  ;;  %v1427_v44 = vld [vmem:[#allocation19 + $0x18] sm:$0xff] }
 0x269   :  { %v1013_v47 = vadd.f32 %v1012_v46, %v1011_v45  ;;  %v1426_v45 = vld [vmem:[#allocation19 + $0x10] sm:$0xff]  ;;  %v1424_v46 = vld [vmem:[#allocation19] sm:$0xff] }
 0x26b   :  { %v1015_v49 = vadd.f32 %v1014_v48, %v1013_v47 }
 0x26d   :  { %v1017_v50 = vadd.f32 %v1016_v17, %v1015_v49 }
 0x26f   :  { %1019 = vrot.lane.b32.xlu0 %v1017_v50, %s2207_s5 }
 0x273   :  { %1220 = vrot.lane.b32.xlu0 %v2391_v7, %s2207_s5  ;;  %v1574_v7 = vld [vmem:[%s2622_s9] ss:$0 sm:$0xff]  ;;  %s2209_s9 = smov 96  }
 0x2d6   :  { %v1205_v63 = vpop.permute.xlu1 %1204 }
 0x2e1   :  { %v1020_v54 = vpop.permute.xlu0 %1019 }
 0x2e2   :  { %v1022_v55 = vsel %vm239_vm1, %v215_v19, %v1020_v54 }
 0x2e3   :  { %1776 = vmatmul.mubr.msk.f32.vlgmr.msra.gmra.mxu1 %vm1038_vm2, %v1022_v55 }
 0x2e4   :  { %1808 = vmatprep.mubr.msk.f32.mxu1 %vm2206_vm0, %v2205_v0  ;;  %1801 = vmatpush3.msra.mxu1 %v1314_v5 }
 0x2e5   :  { %1802 = vmatprep.subr.mxu1 %v2205_v0  ;;  %v1221_v24 = vpop.permute.xlu0 %1220 }
 0x2e6   :  { %1803 = vmatpush3.msra.mxu1 %v1313_v6 }
 0x2e7   :  { %1804 = vmatprep.subr.mxu1 %v2205_v0 }
 0x2e8   :  { %1805 = vmatpush3.msra.mxu1 %v1312_v11 }
 0x2e9   :  { %1806 = vmatprep.subr.mxu1 %v2205_v0 }
 0x2ea   :  { %1807 = vmatpush3.msra.mxu1 %v1311_v21 }
 0x2eb   :  { %1809 = vmatmul.mubr.msk.f32.vlgmr.msra.gmra.mxu1 %vm239_vm1, %v2394_v8 }
 0x3a3   :  { %v1108_v56 = vpop.f32.mrf.mxu1 }
 0x3a4   :  { %v1109_v57 = vadd.f32 %v1574_v7, %v1108_v56 }
 0x3a5   :  { %v1777_v58 = vpop.f32.mrf.mxu1 }
 0x3a6   :  { %v1196_v59 = vadd.f32 %v1193_v52, %v1109_v57  ;;  %v1584_v52 = vld [vmem:[#allocation20] ss:$0 sm:$0xff] }
 0x3a8   :  { %v1578_v60 = vmul.f32 -1.442695, %v1196_v59 }
 0x3aa   :  { %1877 = vpow2.f32 %v1578_v60 }
 0x3ab   :  { %v1391_v31 = vpop.f32.mrf.mxu1 }
 0x3ac   :  { %v1392_v32 = vadd.f32 %v1581_v30, %v1391_v31 }
 0x3ad   :  { %v1810_v33 = vpop.f32.mrf.mxu1 }
 0x3ae   :  { %1403 = vrot.lane.b32.xlu0 %v1392_v32, %s2208_s6 }
 0x3b7   :  { %v1878_v61 = vpop.eup %1877 }
 0x3b8   :  { %v1200_v62 = vadd.f32 1.0, %v1878_v61 }
 0x3ba   :  { %1879 = vrcp.f32 %v1200_v62 }
 0x3c7   :  { %v1880_v1 = vpop.eup %1879 }
 0x3c8   :  { %v1207_v2 = vmul.f32 %v1880_v1, %v1205_v63  ;;  %v1214_v25 = vsub.f32 1.0, %v1880_v1  ;;  %v1223_v27 = vmul.f32 %v1880_v1, %v1221_v24 }
 0x3ca   :  { %1209 = vrot.lane.b32.xlu1 %v1207_v2, %s2208_s6 }
 0x420   :  { %v1404_v12 = vpop.permute.xlu0 %1403 }
 0x43c   :  { %v1210_v3 = vpop.permute.xlu1 %1209 }
 0x43d   :  { %v1212_v4 = vadd.f32 %v1210_v3, %v1109_v57 }
 0x43f   :  { %1881 = vtanh.f32 %v1212_v4 }
 0x44c   :  { %v1882_v23 = vpop.eup %1881 }
 0x44d   :  { %1216 = vrot.lane.b32.xlu1 %v1882_v23, %s2209_s9 }
 0x4bf   :  { %v1217_v26 = vpop.permute.xlu1 %1216 }
 0x4c0   :  { %v1219_v28 = vmul.f32 %v1217_v26, %v1214_v25 }
 0x4c2   :  { %v1224_v29 = vadd.f32 %v1223_v27, %v1219_v28 }
 0x4c4   :  { %1237 = vrot.lane.b32.xlu1 %v1224_v29, %s2209_s9 }
 0x536   :  { %v1238_v34 = vpop.permute.xlu1 %1237 }
 0x537   :  { %1522 = vst.msk [vmem:[#allocation23] sm:$0xff] %vm239_vm1, %v1238_v34  ;;  %1798 = vmatmul.mubr.msk.f32.vlgmr.msra.gmra.mxu0 %vm239_vm1, %v1238_v34 }
 0x538   :  { %1819 = vmatprep.mubr.msk.f32.mxu0 %vm2206_vm0, %v2205_v0  ;;  %1812 = vmatpush3.msra.mxu0 %v1427_v44 }
 0x539   :  { %1813 = vmatprep.subr.mxu0 %v2205_v0 }
 0x53a   :  { %1814 = vmatpush3.msra.mxu0 %v1426_v45 }
 0x53b   :  { %1815 = vmatprep.subr.mxu0 %v2205_v0 }
 0x53c   :  { %1816 = vmatpush3.msra.mxu0 %v1425_v16 }
 0x53d   :  { %1817 = vmatprep.subr.mxu0 %v2205_v0 }
 0x53e   :  { %1818 = vmatpush3.msra.mxu0 %v1424_v46 }
 0x5f7   :  { %v1307_v36 = vpop.f32.mrf.mxu0 }
 0x5f8   :  { %v1308_v37 = vadd.f32 %v1579_v35, %v1307_v36 }
 0x5f9   :  { %v1799_v38 = vpop.f32.mrf.mxu0 }
 0x5fa   :  { %v1395_v39 = vadd.f32 %v1392_v32, %v1308_v37 }
 0x5fc   :  { %v1583_v40 = vmul.f32 -1.442695, %v1395_v39 }
 0x5fe   :  { %1883 = vpow2.f32 %v1583_v40 }
 0x60b   :  { %v1884_v41 = vpop.eup %1883 }
 0x60c   :  { %v1399_v42 = vadd.f32 1.0, %v1884_v41 }
 0x60e   :  { %1885 = vrcp.f32 %v1399_v42 }
 0x61b   :  { %v1886_v13 = vpop.eup %1885 }
 0x61c   :  { %v1406_v14 = vmul.f32 %v1886_v13, %v1404_v12  ;;  %v1413_v48 = vsub.f32 1.0, %v1886_v13 }
 0x61e   :  { %1408 = vrot.lane.b32.xlu1 %v1406_v14, %s2208_s6 }
 0x622   :  { %1419 = vrot.lane.b32.xlu1 %v2394_v8, %s2207_s5 }
 0x690   :  { %v1409_v15 = vpop.permute.xlu1 %1408 }
 0x691   :  { %v1411_v43 = vadd.f32 %v1409_v15, %v1308_v37 }
 0x693   :  { %1887 = vtanh.f32 %v1411_v43 }
 0x694   :  { %v1420_v8 = vpop.permute.xlu1 %1419 }
 0x695   :  { %v1422_v17 = vmul.f32 %v1886_v13, %v1420_v8 }
 0x6a0   :  { %v1888_v47 = vpop.eup %1887 }
 0x6a1   :  { %1415 = vrot.lane.b32.xlu0 %v1888_v47, %s2209_s9 }
 0x713   :  { %v1416_v49 = vpop.permute.xlu0 %1415 }
 0x714   :  { %v1418_v50 = vmul.f32 %v1416_v49, %v1413_v48 }
 0x716   :  { %v1423_v18 = vadd.f32 %v1422_v17, %v1418_v50 }
 0x718   :  { %1436 = vrot.lane.b32.xlu0 %v1423_v18, %s2209_s9 }
 0x78a   :  { %v1437_v51 = vpop.permute.xlu0 %1436 }
 0x78b   :  { %1525 = vst.msk [vmem:[#allocation23 + $0x8] sm:$0xff] %vm239_vm1, %v1437_v51  ;;  %1820 = vmatmul.mubr.msk.f32.vlgmr.msra.gmra.mxu0 %vm239_vm1, %v1437_v51 }
 0x84b   :  { %v1506_v53 = vpop.f32.mrf.mxu0 }
 0x84c   :  { %v1507_v0 = vadd.f32 %v1584_v52, %v1506_v53 }
 0x84d   :  { %v1821_v19 = vpop.f32.mrf.mxu0 }
 0x84e   :  { %1510 = vmax.xlane.f32.xlu1 %v1507_v0 }
 0x8d7   :  { %v1511_v54 = vpop.xlane.xlu1 %1510 }
 0x8d8   :  { %v1512_v55 = vsub.f32 %v1507_v0, %v1511_v54 }
 0x8da   :  { %v1513_v7 = vmul.f32 1.442695, %v1512_v55 }
 0x8dc   :  { %1889 = vpow2.f32 %v1513_v7 }
 0x8e9   :  { %v1890_v56 = vpop.eup %1889 }
 0x8ea   :  { %1515 = vadd.xlane.f32.xlu0 %v1890_v56 }
 0x8eb   :  { %2144 = shalt.err (!%p2141_p8)
}
 0x8ec   :  { %1547 = dma.vmem_to_hbm [thread:$0]  %s1542_s11, 256, %s2631_s18, [#allocation24], %s2193_s19, %s2193_s19, %s2194_s1  }
 0x8ed   :  { %s2211_s10 = smov [#allocation22]  }
 0x8ee   :  { %s1532_s26 = sshll.u32 %s2211_s10, 4  ;;  %s1533_s26 = int_to_ptr.vmem [resolvable:$true] %s1532_s26 }
 0x8ef   :  { %s2153_s15 = scalar_lea.vmem %s1533_s26, 128  ;;  %p2158_p10 = scmp.lt.s32.totalorder %s1533_s26, %s1533_s26 }
 0x8f0   :  { %p2154_p9 = scmp.ne.s32.totalorder %s1533_s26, %s2153_s15  ;;  %p2159_p11 = scmp.lt.s32.totalorder %s2153_s15, %s2153_s15 }
 0x8f2   :  { %p2160_p12 = por %p2159_p11, %p2158_p10 }
 0x8f4   :  { %p2161_p13 = pnand %p2160_p12, %p2154_p9 }
 0x973   :  { %v1516_v57 = vpop.xlane.xlu0 %1515 }
 0x974   :  { %1891 = vlog2.f32 %v1516_v57 }
 0x981   :  { %v1892_v58 = vpop.eup %1891 }
 0x982   :  { %v1518_v59 = vmul.f32 0.6931472, %v1892_v58 }
 0x984   :  { %v1519_v60 = vsub.f32 %v1512_v55, %v1518_v59 }
 0x986   :  { %1520 = vst [vmem:[#allocation22] sm:$0xff] %v1519_v60 }
 0x987   :  { %2164 = shalt.err (!%p2161_p13)
}
 0x988   :  { %1535 = dma.vmem_to_hbm [thread:$0]  %s1533_s26, 128, %s2630_s17, [#allocation4]  }
 0x989   :  { %2187 = dma.done.wait [#allocation4], 128  }
 0x98a   :  { %2188 = vsyncadd [#allocation4], 4294967168 }
 0x98b   :  { %2189 = dma.done.wait [#allocation24], 256  }
 0x98c   :  { %2190 = vsyncadd [#allocation24], 4294967040 }
 0x98d   :  { %1554 = vsyncpa [#allocation3], 1 }
 0x98e   :  { %1555 = vsyncpa [#allocation6], 1 }
 0x98f   :  { %1556 = vsyncpa [#allocation9], 1 }
 0x990   :  { %1557 = vsyncpa [#allocation12], 1 }
 0x991   :  { %1558 = vsyncpa [#allocation15], 1 }
 0x992   :  { %1559 = vsyncpa [#allocation18], 1 }
 0x993   :  { %1560 = vsyncpa [#allocation21], 1 }
 0x994   :  { %1561 = vsyncpa [#allocation4], 1 }
 0x995   :  { %1562 = vsyncpa [#allocation24], 1 }

</bundles_post_ra>
